<compile_context>
chip_gen: v6e
topology: v6e:2x2x1
jax: 0.10.0
libtpu: 0.0.40
codegen_flags: <defaults>
</compile_context>

<pallas_src>
import math

import jax
import jax.numpy as jnp
from jax.experimental import pallas as pl
from jax.experimental.pallas import tpu as pltpu

LEAKY_SLOPE = 0.01   # nn.LeakyReLU() default
BN_EPS = 1e-5        # nn.BatchNorm2d default


def _cdiv(a, b):
    return -(-a // b)


def _round_up(x, m):
    return _cdiv(x, m) * m


# --------------------------------------------------------------------------- #
# Pass 1 kernels: stacked complex-conv matmul + per-channel BN partial sums
# (accumulated into a resident (8, CP) block across the "arbitrary" tile axis).
# --------------------------------------------------------------------------- #
def _stats_kernel(a_ref, w_ref, stats_ref):
    """Recompute path: emit only BN partial sums (conv is recomputed in pass 2)."""
    @pl.when(pl.program_id(1) == 0)
    def _():
        stats_ref[...] = jnp.zeros_like(stats_ref)

    c = jnp.dot(a_ref[...], w_ref[...], preferred_element_type=jnp.float32)
    stats_ref[0:1, :] += jnp.sum(c, axis=0, keepdims=True)
    stats_ref[1:2, :] += jnp.sum(c * c, axis=0, keepdims=True)


def _conv_stats_kernel(a_ref, w_ref, conv_ref, stats_ref):
    """Store path: also store the conv result (bf16) for pass-2 reload."""
    @pl.when(pl.program_id(1) == 0)
    def _():
        stats_ref[...] = jnp.zeros_like(stats_ref)

    c = jnp.dot(a_ref[...], w_ref[...], preferred_element_type=jnp.float32)
    conv_ref[...] = c.astype(conv_ref.dtype)
    stats_ref[0:1, :] += jnp.sum(c, axis=0, keepdims=True)
    stats_ref[1:2, :] += jnp.sum(c * c, axis=0, keepdims=True)


# --------------------------------------------------------------------------- #
# Pass 2 kernels: BatchNorm (precomputed scale/shift) + LeakyReLU
# --------------------------------------------------------------------------- #
def _bn_act_matmul_kernel(a_ref, w_ref, ss_ref, out_ref):
    """Recompute path: redo the matmul from A, then normalize + activate."""
    c = jnp.dot(a_ref[...], w_ref[...], preferred_element_type=jnp.float32)
    y = c * ss_ref[0:1, :] + ss_ref[1:2, :]
    out_ref[...] = jnp.where(y >= 0, y, LEAKY_SLOPE * y)


def _bn_act_reload_kernel(conv_ref, ss_ref, out_ref):
    """Store path: reload the bf16 conv intermediate, normalize + activate."""
    x = conv_ref[...].astype(jnp.float32)
    y = x * ss_ref[0:1, :] + ss_ref[1:2, :]
    out_ref[...] = jnp.where(y >= 0, y, LEAKY_SLOPE * y)


# --------------------------------------------------------------------------- #
# Parameter init matching the PyTorch module's __init__
# --------------------------------------------------------------------------- #
def init_encoder_params(key, in_channels, out_channels, filter_size):
    kh, kw = filter_size
    fan_in = in_channels * kh * kw
    fan_out = out_channels * kh * kw
    wa = math.sqrt(6.0 / (fan_in + fan_out))     # xavier_uniform gain=1
    ba = 1.0 / math.sqrt(fan_in)                 # default PyTorch conv bias init
    k1, k2, k3, k4 = jax.random.split(key, 4)
    w_real = jax.random.uniform(k1, (out_channels, in_channels, kh, kw),
                                jnp.float32, -wa, wa)
    w_im = jax.random.uniform(k2, (out_channels, in_channels, kh, kw),
                              jnp.float32, -wa, wa)
    b_real = jax.random.uniform(k3, (out_channels,), jnp.float32, -ba, ba)
    b_im = jax.random.uniform(k4, (out_channels,), jnp.float32, -ba, ba)
    # Biases kept for API parity; they are exactly cancelled by the following
    # training-mode BatchNorm (gamma=1, beta=0), so the kernels never read them.
    return dict(w_real=w_real, w_im=w_im, b_real=b_real, b_im=b_im)


# --------------------------------------------------------------------------- #
# Forward wrapper
# --------------------------------------------------------------------------- #
def encoder_forward(x, params, filter_size=(7, 5), stride_size=(2, 2)):
    """x: (N, C_in, H, W, 2) float32 -> (N, C_out, Ho, Wo, 2) float32."""
    kh, kw = filter_size
    sh, sw = stride_size
    n, c_in, h, w = x.shape[:4]
    c_out = params["w_real"].shape[0]
    ho = (h - kh) // sh + 1
    wo = (w - kw) // sw + 1
    m = n * ho * wo
    k = c_in * kh * kw
    k2 = 2 * k

    # --- patches: stack real/imag as extra input channels so one patches call
    # yields A = [A_real | A_im] with (C, kh, kw)-major feature ordering (matching
    # the PyTorch (C_out, C_in, kh, kw) weight flattening).  Cast to bf16 before
    # expansion and emit channel-last directly so the big slab needs no relayout.
    x_ri = jnp.concatenate([x[..., 0], x[..., 1]], axis=1).astype(jnp.bfloat16)
    patches = jax.lax.conv_general_dilated_patches(
        x_ri, filter_shape=(kh, kw), window_strides=(sh, sw), padding="VALID",
        dimension_numbers=("NCHW", "OIHW", "NHWC"))          # (N, Ho, Wo, 2K) bf16
    a = patches.reshape(m, k2)

    # --- stacked weights: one matmul produces [c_real | c_im].
    #   cols [0, C_out)      : A_r @ wr - A_i @ wi = c_real
    #   cols [C_out, 2C_out) : A_r @ wi + A_i @ wr = c_im
    wr = params["w_real"].reshape(c_out, k).T                # (K, C_out)
    wi = params["w_im"].reshape(c_out, k).T                  # (K, C_out)
    w_stk = jnp.concatenate(
        [jnp.concatenate([wr, wi], axis=1),
         jnp.concatenate([-wi, wr], axis=1)], axis=0)        # (2K, 2*C_out)

    # --- lane padding + M tiling (VMEM-budgeted, balanced for v7x megacore) ---- #
    k2p = _round_up(k2, 128)
    cp = _round_up(2 * c_out, 128)

    budget = 12 * 1024 * 1024                                # fits v5e's 16 MiB scoped
    per_row = 2 * (k2p * 2) + 2 * (cp * 4)                   # dbl-buffered bf16 A + f32 out
    tile_cap = max(128, min(1024, (budget - k2p * cp * 2) // per_row)) // 16 * 16
    n_tiles = _cdiv(m, tile_cap)
    n_split = 2 if n_tiles >= 2 else 1                       # 2 balanced shards on v7x
    n_tiles = _round_up(n_tiles, n_split)
    tile_m = _round_up(_cdiv(m, n_tiles), 16)
    tps = n_tiles // n_split
    m_pad = n_tiles * tile_m

    a = jnp.pad(a, ((0, m_pad - m), (0, k2p - k2)))
    w_pad = jnp.pad(w_stk, ((0, k2p - k2), (0, cp - 2 * c_out))).astype(jnp.bfloat16)

    cparams1 = pltpu.CompilerParams(
        dimension_semantics=("parallel", "arbitrary"),       # stats accumulate over t
        vmem_limit_bytes=32 * 1024 * 1024)
    cparams2 = pltpu.CompilerParams(
        dimension_semantics=("parallel", "parallel"),
        vmem_limit_bytes=32 * 1024 * 1024)

    a_spec = pl.BlockSpec((tile_m, k2p), lambda s, t: (s * tps + t, 0))
    w_spec = pl.BlockSpec((k2p, cp), lambda s, t: (0, 0))
    stats_spec = pl.BlockSpec((8, cp), lambda s, t: (s, 0))
    row_spec = pl.BlockSpec((tile_m, cp), lambda s, t: (s * tps + t, 0))
    ss_spec = pl.BlockSpec((8, cp), lambda s, t: (0, 0))

    # Recompute the matmul in pass 2 only when re-reading bf16 A is cheaper than
    # storing + reloading the conv intermediate (small-C_in layers).
    recompute = k2p <= 2 * cp

    # --- pass 1: matmul + resident BN partial-sum accumulators ---------------- #
    if recompute:
        stats = pl.pallas_call(
            _stats_kernel,
            out_shape=jax.ShapeDtypeStruct((n_split * 8, cp), jnp.float32),
            grid=(n_split, tps),
            in_specs=[a_spec, w_spec],
            out_specs=stats_spec,
            compiler_params=cparams1,
            cost_estimate=pl.CostEstimate(
                flops=2 * m_pad * k2p * cp, transcendentals=0,
                bytes_accessed=2 * m_pad * k2p + 2 * k2p * cp + 4 * n_split * 8 * cp),
        )(a, w_pad)
        conv = None
    else:
        conv, stats = pl.pallas_call(
            _conv_stats_kernel,
            out_shape=(jax.ShapeDtypeStruct((m_pad, cp), jnp.bfloat16),
                       jax.ShapeDtypeStruct((n_split * 8, cp), jnp.float32)),
            grid=(n_split, tps),
            in_specs=[a_spec, w_spec],
            out_specs=(row_spec, stats_spec),
            compiler_params=cparams1,
            cost_estimate=pl.CostEstimate(
                flops=2 * m_pad * k2p * cp, transcendentals=0,
                bytes_accessed=2 * m_pad * k2p + 2 * k2p * cp
                               + 2 * m_pad * cp + 4 * n_split * 8 * cp),
        )(a, w_pad)

    # --- BN statistics over the true M rows (padded rows contribute zero) ----- #
    stats = stats.reshape(n_split, 8, cp).sum(axis=0)
    mean = stats[0] / m
    # TODO(synk): E[x^2] - mean^2 in f32 cancels badly when |mean| >> std; switch to
    # a Welford / per-tile-centered combine if that regime ever shows up here.
    var = jnp.maximum(stats[1] / m - mean * mean, 0.0)       # biased batch variance
    rstd = jax.lax.rsqrt(var + BN_EPS)
    scale_shift = jnp.zeros((8, cp), jnp.float32)
    scale_shift = scale_shift.at[0].set(rstd).at[1].set(-mean * rstd)

    # --- pass 2: normalize + LeakyReLU ---------------------------------------- #
    if recompute:
        y = pl.pallas_call(
            _bn_act_matmul_kernel,
            out_shape=jax.ShapeDtypeStruct((m_pad, cp), jnp.float32),
            grid=(n_split, tps),
            in_specs=[a_spec, w_spec, ss_spec],
            out_specs=row_spec,
            compiler_params=cparams2,
            cost_estimate=pl.CostEstimate(
                flops=2 * m_pad * k2p * cp + 3 * m_pad * cp, transcendentals=0,
                bytes_accessed=2 * m_pad * k2p + 2 * k2p * cp
                               + 4 * 8 * cp + 4 * m_pad * cp),
        )(a, w_pad, scale_shift)
    else:
        y = pl.pallas_call(
            _bn_act_reload_kernel,
            out_shape=jax.ShapeDtypeStruct((m_pad, cp), jnp.float32),
            grid=(n_split, tps),
            in_specs=[row_spec, ss_spec],
            out_specs=row_spec,
            compiler_params=cparams2,
            cost_estimate=pl.CostEstimate(
                flops=3 * m_pad * cp, transcendentals=0,
                bytes_accessed=2 * m_pad * cp + 4 * 8 * cp + 4 * m_pad * cp),
        )(conv, scale_shift)

    # --- un-pad and restore (N, C_out, Ho, Wo, 2) layout ----------------------- #
    y = y[:m]
    y_real = y[:, :c_out]
    y_im = y[:, c_out:2 * c_out]

    def to_nchw(t):
        return t.reshape(n, ho, wo, c_out).transpose(0, 3, 1, 2)

    return jnp.stack([to_nchw(y_real), to_nchw(y_im)], axis=-1)


# --------------------------------------------------------------------------- #
# Pure-JAX f32 reference (keeps the conv bias; BN cancels it -> must match kernels)
# --------------------------------------------------------------------------- #
def _reference_forward(x, params, filter_size=(7, 5), stride_size=(2, 2)):
    def conv(inp, w, b):
        out = jax.lax.conv_general_dilated(
            inp, w, window_strides=stride_size, padding="VALID",
            dimension_numbers=("NCHW", "OIHW", "NCHW"),
            precision=jax.lax.Precision.HIGHEST)
        return out + b[None, :, None, None]

    xr, xi = x[..., 0], x[..., 1]
    wr, wi = params["w_real"], params["w_im"]
    br, bi = params["b_real"], params["b_im"]
    cr = conv(xr, wr, br) - conv(xi, wi, bi)
    ci = conv(xr, wi, bi) + conv(xi, wr, br)

    def bn(t):
        mean = t.mean(axis=(0, 2, 3), keepdims=True)
        var = ((t - mean) ** 2).mean(axis=(0, 2, 3), keepdims=True)
        return (t - mean) * jax.lax.rsqrt(var + BN_EPS)

    act = lambda t: jnp.where(t >= 0, t, LEAKY_SLOPE * t)
    return jnp.stack([act(bn(cr)), act(bn(ci))], axis=-1)


if __name__ == "__main__":
    key = jax.random.PRNGKey(0)
    k1, k2, k3, k4 = jax.random.split(key, 4)

    def run_case(name, n, c_in, c_out, h, w, kx, kp):
        x = jax.random.normal(kx, (n, c_in, h, w, 2), dtype=jnp.float32)
        params = init_encoder_params(kp, in_channels=c_in, out_channels=c_out,
                                     filter_size=(7, 5))
        fwd = jax.jit(encoder_forward)
        out = jax.block_until_ready(fwd(x, params))
        ho, wo = (h - 7) // 2 + 1, (w - 5) // 2 + 1
        assert out.shape == (n, c_out, ho, wo, 2), (name, out.shape)
        assert bool(jnp.all(jnp.isfinite(out))), name
        ref = jax.block_until_ready(_reference_forward(x, params))
        max_err = float(jnp.max(jnp.abs(out - ref)))
        assert max_err < 5e-2, f"{name}: mismatch vs reference, max abs err {max_err}"

    # Default Encoder config (in_channels=1, out_channels=45): recompute path.
    run_case("default", 2, 1, 45, 16, 16, k1, k2)
    # Wider-input config (K2P > 2*CP): exercises the store-and-reload path.
    run_case("wide_in", 2, 8, 4, 16, 16, k3, k4)

    print("KERNEL_OK")
</pallas_src>

<mosaic_0001>
module attributes {stable_mosaic.version = 11 : i64} {
  func.func @_stats_kernel(%arg0: i32, %arg1: i32, %arg2: memref<64x128xbf16, #tpu.memory_space<vmem>>, %arg3: memref<128x128xbf16, #tpu.memory_space<vmem>>, %arg4: memref<8x128xf32, #tpu.memory_space<vmem>>) attributes {dimension_semantics = [#tpu.dimension_semantics<parallel>, #tpu.dimension_semantics<arbitrary>], iteration_bounds = array<i64: 1, 1>, scalar_prefetch = 0 : i64, scratch_operands = 0 : i64, tpu.core_type = #tpu.core_type<tc>, window_params = [{transform_indices = @transform_0, window_bounds = array<i64: 64, 128>}, {pipeline_mode = #tpu.pipeline_mode<synchronous>, transform_indices = @transform_1, window_bounds = array<i64: 128, 128>}, {transform_indices = @transform_2, window_bounds = array<i64: 8, 128>}]} {
    %c0_i32 = arith.constant 0 : i32
    %0 = arith.cmpi eq, %arg1, %c0_i32 : i32
    %1 = arith.extui %0 : i1 to i32
    %c0_i32_0 = arith.constant 0 : i32
    %2 = arith.cmpi ne, %1, %c0_i32_0 : i32
    scf.if %2 {
      %cst_13 = arith.constant 0.000000e+00 : f32
      %17 = vector.broadcast %cst_13 : f32 to vector<8x128xf32>
      %c0_14 = arith.constant 0 : index
      %c0_15 = arith.constant 0 : index
      %18 = vector.load %arg4[%c0_14, %c0_15] : memref<8x128xf32, #tpu.memory_space<vmem>>, vector<8x128xf32>
      tpu.vector_store %arg4[%c0_14, %c0_15], %17 {strides = array<i32>} : memref<8x128xf32, #tpu.memory_space<vmem>>, vector<8x128xf32>,
    } else {
    }
    %c0 = arith.constant 0 : index
    %c0_1 = arith.constant 0 : index
    %3 = vector.load %arg2[%c0, %c0_1] : memref<64x128xbf16, #tpu.memory_space<vmem>>, vector<64x128xbf16>
    %c0_2 = arith.constant 0 : index
    %c0_3 = arith.constant 0 : index
    %4 = vector.load %arg3[%c0_2, %c0_3] : memref<128x128xbf16, #tpu.memory_space<vmem>>, vector<128x128xbf16>
    %cst = arith.constant dense<0.000000e+00> : vector<64x128xf32>
    %5 = tpu.matmul %3, %4, %cst {dimension_numbers = #tpu.dot_dimension_numbers<[1], [0], [0], [1], [0, 0, 1, 1], [], []>} : vector<64x128xbf16>, vector<128x128xbf16>, vector<64x128xf32> -> vector<64x128xf32>
    %c0_4 = arith.constant 0 : index
    %c0_5 = arith.constant 0 : index
    %6 = vector.load %arg4[%c0_4, %c0_5] : memref<8x128xf32, #tpu.memory_space<vmem>>, vector<1x128xf32>
    %cst_6 = arith.constant dense<0.000000e+00> : vector<128xf32>
    %7 = vector.multi_reduction <add>, %5, %cst_6 [0] : vector<64x128xf32> to vector<128xf32>
    %8 = vector.shape_cast %7 : vector<128xf32> to vector<1x128xf32>
    %9 = arith.addf %6, %8 : vector<1x128xf32>
    %c0_7 = arith.constant 0 : index
    %c0_8 = arith.constant 0 : index
    %10 = vector.load %arg4[%c0_7, %c0_8] : memref<8x128xf32, #tpu.memory_space<vmem>>, vector<1x128xf32>
    tpu.vector_store %arg4[%c0_7, %c0_8], %9 {strides = array<i32>} : memref<8x128xf32, #tpu.memory_space<vmem>>, vector<1x128xf32>,
    %c1 = arith.constant 1 : index
    %c0_9 = arith.constant 0 : index
    %11 = vector.load %arg4[%c1, %c0_9] : memref<8x128xf32, #tpu.memory_space<vmem>>, vector<1x128xf32>
    %12 = arith.mulf %5, %5 : vector<64x128xf32>
    %cst_10 = arith.constant dense<0.000000e+00> : vector<128xf32>
    %13 = vector.multi_reduction <add>, %12, %cst_10 [0] : vector<64x128xf32> to vector<128xf32>
    %14 = vector.shape_cast %13 : vector<128xf32> to vector<1x128xf32>
    %15 = arith.addf %11, %14 : vector<1x128xf32>
    %c1_11 = arith.constant 1 : index
    %c0_12 = arith.constant 0 : index
    %16 = vector.load %arg4[%c1_11, %c0_12] : memref<8x128xf32, #tpu.memory_space<vmem>>, vector<1x128xf32>
    tpu.vector_store %arg4[%c1_11, %c0_12], %15 {strides = array<i32>} : memref<8x128xf32, #tpu.memory_space<vmem>>, vector<1x128xf32>,
    return
  }
  func.func @transform_0(%arg0: i32, %arg1: i32) -> (i32, i32) {
    %c1_i32 = arith.constant 1 : i32
    %0 = arith.muli %arg0, %c1_i32 : i32
    %1 = arith.addi %0, %arg1 : i32
    %c0_i32 = arith.constant 0 : i32
    %c0_i32_0 = arith.constant 0 : i32
    return %1, %c0_i32 : i32, i32
  }
  func.func @transform_1(%arg0: i32, %arg1: i32) -> (i32, i32) {
    %c0_i32 = arith.constant 0 : i32
    %c0_i32_0 = arith.constant 0 : i32
    %c0_i32_1 = arith.constant 0 : i32
    return %c0_i32, %c0_i32_0 : i32, i32
  }
  func.func @transform_2(%arg0: i32, %arg1: i32) -> (i32, i32) {
    %c0_i32 = arith.constant 0 : i32
    %c0_i32_0 = arith.constant 0 : i32
    return %arg0, %c0_i32 : i32, i32
  }
}

module attributes {stable_mosaic.version = 11 : i64} {
  func.func @_bn_act_matmul_kernel(%arg0: i32, %arg1: i32, %arg2: memref<64x128xbf16, #tpu.memory_space<vmem>>, %arg3: memref<128x128xbf16, #tpu.memory_space<vmem>>, %arg4: memref<8x128xf32, #tpu.memory_space<vmem>>, %arg5: memref<64x128xf32, #tpu.memory_space<vmem>>) attributes {dimension_semantics = [#tpu.dimension_semantics<parallel>, #tpu.dimension_semantics<parallel>], iteration_bounds = array<i64: 1, 1>, scalar_prefetch = 0 : i64, scratch_operands = 0 : i64, tpu.core_type = #tpu.core_type<tc>, window_params = [{transform_indices = @transform_0, window_bounds = array<i64: 64, 128>}, {pipeline_mode = #tpu.pipeline_mode<synchronous>, transform_indices = @transform_1, window_bounds = array<i64: 128, 128>}, {pipeline_mode = #tpu.pipeline_mode<synchronous>, transform_indices = @transform_2, window_bounds = array<i64: 8, 128>}, {transform_indices = @transform_3, window_bounds = array<i64: 64, 128>}]} {
    %c0 = arith.constant 0 : index
    %c0_0 = arith.constant 0 : index
    %0 = vector.load %arg2[%c0, %c0_0] : memref<64x128xbf16, #tpu.memory_space<vmem>>, vector<64x128xbf16>
    %c0_1 = arith.constant 0 : index
    %c0_2 = arith.constant 0 : index
    %1 = vector.load %arg3[%c0_1, %c0_2] : memref<128x128xbf16, #tpu.memory_space<vmem>>, vector<128x128xbf16>
    %cst = arith.constant dense<0.000000e+00> : vector<64x128xf32>
    %2 = tpu.matmul %0, %1, %cst {dimension_numbers = #tpu.dot_dimension_numbers<[1], [0], [0], [1], [0, 0, 1, 1], [], []>} : vector<64x128xbf16>, vector<128x128xbf16>, vector<64x128xf32> -> vector<64x128xf32>
    %c0_3 = arith.constant 0 : index
    %c0_4 = arith.constant 0 : index
    %3 = vector.load %arg4[%c0_3, %c0_4] : memref<8x128xf32, #tpu.memory_space<vmem>>, vector<1x128xf32>
    %4 = vector.broadcast %3 : vector<1x128xf32> to vector<64x128xf32>
    %5 = arith.mulf %2, %4 : vector<64x128xf32>
    %c1 = arith.constant 1 : index
    %c0_5 = arith.constant 0 : index
    %6 = vector.load %arg4[%c1, %c0_5] : memref<8x128xf32, #tpu.memory_space<vmem>>, vector<1x128xf32>
    %7 = vector.broadcast %6 : vector<1x128xf32> to vector<64x128xf32>
    %8 = arith.addf %5, %7 : vector<64x128xf32>
    %cst_6 = arith.constant 0.000000e+00 : f32
    %9 = vector.broadcast %cst_6 : f32 to vector<64x128xf32>
    %10 = arith.cmpf oge, %8, %9 : vector<64x128xf32>
    %cst_7 = arith.constant 0.00999999977 : f32
    %11 = vector.broadcast %cst_7 : f32 to vector<64x128xf32>
    %12 = arith.mulf %11, %8 : vector<64x128xf32>
    %13 = arith.select %10, %8, %12 : vector<64x128xi1>, vector<64x128xf32>
    %c0_8 = arith.constant 0 : index
    %c0_9 = arith.constant 0 : index
    %14 = vector.load %arg5[%c0_8, %c0_9] : memref<64x128xf32, #tpu.memory_space<vmem>>, vector<64x128xf32>
    tpu.vector_store %arg5[%c0_8, %c0_9], %13 {strides = array<i32>} : memref<64x128xf32, #tpu.memory_space<vmem>>, vector<64x128xf32>,
    return
  }
  func.func @transform_0(%arg0: i32, %arg1: i32) -> (i32, i32) {
    %c1_i32 = arith.constant 1 : i32
    %0 = arith.muli %arg0, %c1_i32 : i32
    %1 = arith.addi %0, %arg1 : i32
    %c0_i32 = arith.constant 0 : i32
    %c0_i32_0 = arith.constant 0 : i32
    return %1, %c0_i32 : i32, i32
  }
  func.func @transform_1(%arg0: i32, %arg1: i32) -> (i32, i32) {
    %c0_i32 = arith.constant 0 : i32
    %c0_i32_0 = arith.constant 0 : i32
    %c0_i32_1 = arith.constant 0 : i32
    return %c0_i32, %c0_i32_0 : i32, i32
  }
  func.func @transform_2(%arg0: i32, %arg1: i32) -> (i32, i32) {
    %c0_i32 = arith.constant 0 : i32
    %c0_i32_0 = arith.constant 0 : i32
    %c0_i32_1 = arith.constant 0 : i32
    return %c0_i32, %c0_i32_0 : i32, i32
  }
  func.func @transform_3(%arg0: i32, %arg1: i32) -> (i32, i32) {
    %c1_i32 = arith.constant 1 : i32
    %0 = arith.muli %arg0, %c1_i32 : i32
    %1 = arith.addi %0, %arg1 : i32
    %c0_i32 = arith.constant 0 : i32
    %c0_i32_0 = arith.constant 0 : i32
    return %1, %c0_i32 : i32, i32
  }
}

</mosaic_0001>

<bundles_post_ra>
// kernel: encoder_forward.3
= control target key start
LH: loop header
LB: loop body
LE: loop exit
PB: predicated region body
PF: predicated region fallthrough
CT: control target
= control target key end

     0   :  { %s466_s1 = inlined_call_operand.vmem [shape: bf16[128,128], index: 1, kind: input, shape index: {}]   ;;  %s467_s0 = inlined_call_operand.vmem [shape: bf16[64,128], index: 0, kind: input, shape index: {}]   ;;  %s468_s2 = inlined_call_operand.vmem [shape: f32[8,128], index: 2, kind: input, shape index: {}]   ;;  %s469_s3 = inlined_call_operand.vmem [shape: f32[64,128], index: 3, kind: output, shape index: {}]  }
   0x1   :  { %v368_v0 = vld [vmem:[%s466_s1 + $0x38] sm:$0xff]   ;;  %v369_v1 = vld [vmem:[%s466_s1 + $0x30] sm:$0xff]   ;;  %v370_v2 = vld [vmem:[%s466_s1 + $0x28] sm:$0xff]  }
   0x2   :  { %328 = vmatprep.subr.bf16.mxu0 %v368_v0  ;;  %352 = vmatprep.subr.bf16.mxu1 %v368_v0  ;;  %v371_v3 = vld [vmem:[%s466_s1 + $0x20] sm:$0xff]   ;;  %v377_v5 = vld [vmem:[%s467_s0 + $0x10] sm:$0xff]   ;;  %v372_v6 = vld [vmem:[%s466_s1 + $0x18] sm:$0xff]  }
   0x3   :  { %329 = vmatpush3.bf16.msra.mxu0 %v368_v0  ;;  %360 = vmatpush3.bf16.msra.mxu1 %v368_v0  ;;  %v376_v4 = vld [vmem:[%s467_s0] sm:$0xff]   ;;  %v373_v7 = vld [vmem:[%s466_s1 + $0x10] sm:$0xff]   ;;  %v374_v8 = vld [vmem:[%s466_s1 + $0x8] sm:$0xff]  }
   0x4   :  { %330 = vmatprep.subr.bf16.mxu0 %v369_v1  ;;  %353 = vmatprep.subr.bf16.mxu1 %v369_v1  ;;  %v375_v9 = vld [vmem:[%s466_s1] sm:$0xff]   ;;  %v378_v10 = vld [vmem:[%s467_s0 + $0x8] sm:$0xff]   ;;  %v379_v11 = vld [vmem:[%s467_s0 + $0x18] sm:$0xff]  }
   0x5   :  { %344 = vmatprep.mubr.bf16.mxu0 %v376_v4  ;;  %348 = vmatprep.mubr.bf16.mxu1 %v377_v5  ;;  %v314_v12 = vld [vmem:[%s468_s2] ss:$0 sm:$0xff]  ;;  %v315_v14 = vld [vmem:[%s468_s2 + $0x1] ss:$0 sm:$0xff] }
   0x7   :  { %331 = vmatpush3.bf16.msra.mxu0 %v369_v1  ;;  %361 = vmatpush3.bf16.msra.mxu1 %v369_v1 }
   0x8   :  { %332 = vmatprep.subr.bf16.mxu0 %v370_v2  ;;  %354 = vmatprep.subr.bf16.mxu1 %v370_v2 }
   0xb   :  { %333 = vmatpush3.bf16.msra.mxu0 %v370_v2  ;;  %362 = vmatpush3.bf16.msra.mxu1 %v370_v2 }
   0xc   :  { %334 = vmatprep.subr.bf16.mxu0 %v371_v3  ;;  %355 = vmatprep.subr.bf16.mxu1 %v371_v3 }
   0xf   :  { %335 = vmatpush3.bf16.msra.mxu0 %v371_v3  ;;  %363 = vmatpush3.bf16.msra.mxu1 %v371_v3 }
  0x10   :  { %336 = vmatprep.subr.bf16.mxu0 %v372_v6  ;;  %356 = vmatprep.subr.bf16.mxu1 %v372_v6 }
  0x13   :  { %337 = vmatpush3.bf16.msra.mxu0 %v372_v6  ;;  %364 = vmatpush3.bf16.msra.mxu1 %v372_v6 }
  0x14   :  { %338 = vmatprep.subr.bf16.mxu0 %v373_v7  ;;  %357 = vmatprep.subr.bf16.mxu1 %v373_v7 }
  0x17   :  { %339 = vmatpush3.bf16.msra.mxu0 %v373_v7  ;;  %365 = vmatpush3.bf16.msra.mxu1 %v373_v7 }
  0x18   :  { %340 = vmatprep.subr.bf16.mxu0 %v374_v8  ;;  %358 = vmatprep.subr.bf16.mxu1 %v374_v8 }
  0x1b   :  { %341 = vmatpush3.bf16.msra.mxu0 %v374_v8  ;;  %366 = vmatpush3.bf16.msra.mxu1 %v374_v8 }
  0x1c   :  { %342 = vmatprep.subr.bf16.mxu0 %v375_v9  ;;  %359 = vmatprep.subr.bf16.mxu1 %v375_v9 }
  0x1f   :  { %343 = vmatpush3.bf16.msra.mxu0 %v375_v9  ;;  %367 = vmatpush3.bf16.msra.mxu1 %v375_v9 }
  0x22   :  { %345 = vmatmul.mubr.bf16.vlgmr.msra.gmra.mxu0 %v378_v10  ;;  %349 = vmatmul.mubr.bf16.vlgmr.msra.gmra.mxu1 %v379_v11 }
  0xe2   :  { %v346_v13 = vpop.f32.mrf.mxu0  ;;  %v350_v15 = vpop.f32.mrf.mxu1 }
  0xe3   :  { %v219_v16 = vmul.f32 %v346_v13, %v314_v12  ;;  %v223_v17 = vmul.f32 %v350_v15, %v314_v12 }
  0xe4   :  { %v181_v18 = vpop.f32.mrf.mxu0  ;;  %v197_v19 = vpop.f32.mrf.mxu1 }
  0xe5   :  { %v232_v20 = vadd.f32 %v315_v14, %v219_v16  ;;  %v236_v21 = vadd.f32 %v315_v14, %v223_v17  ;;  %v217_v22 = vmul.f32 %v314_v12, %v181_v18  ;;  %v221_v23 = vmul.f32 %v314_v12, %v197_v19 }
  0xe6   :  { %v347_v24 = vpop.f32.mrf.mxu0  ;;  %v351_v25 = vpop.f32.mrf.mxu1 }
  0xe7   :  { %vm240_vm0 = vcmp.ge.f32.partialorder %v232_v20, 0.0  ;;  %v248_v26 = vmul.f32 0.01, %v232_v20  ;;  %vm244_vm1 = vcmp.ge.f32.partialorder %v236_v21, 0.0  ;;  %v252_v27 = vmul.f32 0.01, %v236_v21 }
  0xe8   :  { %v230_v28 = vadd.f32 %v315_v14, %v217_v22  ;;  %v234_v29 = vadd.f32 %v315_v14, %v221_v23  ;;  %v220_v30 = vmul.f32 %v347_v24, %v314_v12  ;;  %v224_v31 = vmul.f32 %v351_v25, %v314_v12  ;;  %v184_v32 = vpop.f32.mrf.mxu0  ;;  %v200_v33 = vpop.f32.mrf.mxu1 }
  0xe9   :  { %v256_v34 = vsel %vm240_vm0, %v232_v20, %v248_v26  ;;  %v260_v35 = vsel %vm244_vm1, %v236_v21, %v252_v27  ;;  %v218_v36 = vmul.f32 %v314_v12, %v184_v32  ;;  %v222_v37 = vmul.f32 %v314_v12, %v200_v33 }
  0xea   :  { %264 = vst [vmem:[%s469_s3 + $0x10] sm:$0xff] %v256_v34  ;;  %268 = vst [vmem:[%s469_s3 + $0x30] sm:$0xff] %v260_v35  ;;  %vm238_vm2 = vcmp.ge.f32.partialorder %v230_v28, 0.0  ;;  %v246_v38 = vmul.f32 0.01, %v230_v28  ;;  %vm242_vm3 = vcmp.ge.f32.partialorder %v234_v29, 0.0  ;;  %v233_v40 = vadd.f32 %v315_v14, %v220_v30 }
  0xeb   :  { %v250_v39 = vmul.f32 0.01, %v234_v29  ;;  %v237_v41 = vadd.f32 %v315_v14, %v224_v31  ;;  %v231_v42 = vadd.f32 %v315_v14, %v218_v36  ;;  %v235_v43 = vadd.f32 %v315_v14, %v222_v37 }
  0xec   :  { %v254_v44 = vsel %vm238_vm2, %v230_v28, %v246_v38  ;;  %vm241_vm4 = vcmp.ge.f32.partialorder %v233_v40, 0.0  ;;  %v249_v46 = vmul.f32 0.01, %v233_v40 }
  0xed   :  { %v258_v45 = vsel %vm242_vm3, %v234_v29, %v250_v39  ;;  %262 = vst [vmem:[%s469_s3] sm:$0xff] %v254_v44  ;;  %vm245_vm5 = vcmp.ge.f32.partialorder %v237_v41, 0.0  ;;  %v253_v47 = vmul.f32 0.01, %v237_v41  ;;  %vm239_vm6 = vcmp.ge.f32.partialorder %v231_v42, 0.0 }
  0xee   :  { %266 = vst [vmem:[%s469_s3 + $0x20] sm:$0xff] %v258_v45  ;;  %v247_v48 = vmul.f32 0.01, %v231_v42  ;;  %vm243_vm7 = vcmp.ge.f32.partialorder %v235_v43, 0.0  ;;  %v251_v49 = vmul.f32 0.01, %v235_v43  ;;  %v257_v50 = vsel %vm241_vm4, %v233_v40, %v249_v46 }
  0xef   :  { %v261_v51 = vsel %vm245_vm5, %v237_v41, %v253_v47  ;;  %265 = vst [vmem:[%s469_s3 + $0x18] sm:$0xff] %v257_v50 }
  0xf0   :  { %269 = vst [vmem:[%s469_s3 + $0x38] sm:$0xff] %v261_v51  ;;  %v255_v52 = vsel %vm239_vm6, %v231_v42, %v247_v48  ;;  %v259_v53 = vsel %vm243_vm7, %v235_v43, %v251_v49 }
  0xf1   :  { %263 = vst [vmem:[%s469_s3 + $0x8] sm:$0xff] %v255_v52  ;;  %267 = vst [vmem:[%s469_s3 + $0x28] sm:$0xff] %v259_v53 }

// kernel: encoder_forward.2
= control target key start
LH: loop header
LB: loop body
LE: loop exit
PB: predicated region body
PF: predicated region fallthrough
CT: control target
= control target key end

     0   :  { %v327_v12 = vmov 0.0   ;;  %s394_s1 = inlined_call_operand.vmem [shape: bf16[128,128], index: 1, kind: input, shape index: {}]   ;;  %s395_s0 = inlined_call_operand.vmem [shape: bf16[64,128], index: 0, kind: input, shape index: {}]   ;;  %s396_s2 = inlined_call_operand.vmem [shape: f32[8,128], index: 2, kind: output, shape index: {}]  }
   0x1   :  { %v315_v0 = vld [vmem:[%s394_s1 + $0x38] sm:$0xff]   ;;  %v316_v1 = vld [vmem:[%s394_s1 + $0x30] sm:$0xff]   ;;  %v317_v2 = vld [vmem:[%s394_s1 + $0x28] sm:$0xff]   ;;  %38 = vst [vmem:[%s396_s2] sm:$0xff] %v327_v12 }
   0x2   :  { %274 = vmatprep.subr.bf16.mxu0 %v315_v0  ;;  %298 = vmatprep.subr.bf16.mxu1 %v315_v0  ;;  %v318_v3 = vld [vmem:[%s394_s1 + $0x20] sm:$0xff]   ;;  %v325_v5 = vld [vmem:[%s395_s0 + $0x10] sm:$0xff]   ;;  %v319_v6 = vld [vmem:[%s394_s1 + $0x18] sm:$0xff]  }
   0x3   :  { %275 = vmatpush3.bf16.msra.mxu0 %v315_v0  ;;  %306 = vmatpush3.bf16.msra.mxu1 %v315_v0  ;;  %v323_v4 = vld [vmem:[%s395_s0] sm:$0xff]   ;;  %v320_v7 = vld [vmem:[%s394_s1 + $0x10] sm:$0xff]   ;;  %v321_v8 = vld [vmem:[%s394_s1 + $0x8] sm:$0xff]  }
   0x4   :  { %276 = vmatprep.subr.bf16.mxu0 %v316_v1  ;;  %299 = vmatprep.subr.bf16.mxu1 %v316_v1  ;;  %v322_v9 = vld [vmem:[%s394_s1] sm:$0xff]   ;;  %v324_v10 = vld [vmem:[%s395_s0 + $0x8] sm:$0xff]   ;;  %v326_v11 = vld [vmem:[%s395_s0 + $0x18] sm:$0xff]  }
   0x5   :  { %290 = vmatprep.mubr.bf16.mxu0 %v323_v4  ;;  %294 = vmatprep.mubr.bf16.mxu1 %v325_v5 }
   0x7   :  { %277 = vmatpush3.bf16.msra.mxu0 %v316_v1  ;;  %307 = vmatpush3.bf16.msra.mxu1 %v316_v1 }
   0x8   :  { %278 = vmatprep.subr.bf16.mxu0 %v317_v2  ;;  %300 = vmatprep.subr.bf16.mxu1 %v317_v2  ;;  %v200_v52 = vld [vmem:[%s396_s2] sm:$0x1]  ;;  %v216_v55 = vld [vmem:[%s396_s2 + $0x1] sm:$0x1] }
   0xb   :  { %279 = vmatpush3.bf16.msra.mxu0 %v317_v2  ;;  %308 = vmatpush3.bf16.msra.mxu1 %v317_v2 }
   0xc   :  { %280 = vmatprep.subr.bf16.mxu0 %v318_v3  ;;  %301 = vmatprep.subr.bf16.mxu1 %v318_v3 }
   0xf   :  { %281 = vmatpush3.bf16.msra.mxu0 %v318_v3  ;;  %309 = vmatpush3.bf16.msra.mxu1 %v318_v3 }
  0x10   :  { %282 = vmatprep.subr.bf16.mxu0 %v319_v6  ;;  %302 = vmatprep.subr.bf16.mxu1 %v319_v6 }
  0x13   :  { %283 = vmatpush3.bf16.msra.mxu0 %v319_v6  ;;  %310 = vmatpush3.bf16.msra.mxu1 %v319_v6 }
  0x14   :  { %284 = vmatprep.subr.bf16.mxu0 %v320_v7  ;;  %303 = vmatprep.subr.bf16.mxu1 %v320_v7 }
  0x17   :  { %285 = vmatpush3.bf16.msra.mxu0 %v320_v7  ;;  %311 = vmatpush3.bf16.msra.mxu1 %v320_v7 }
  0x18   :  { %286 = vmatprep.subr.bf16.mxu0 %v321_v8  ;;  %304 = vmatprep.subr.bf16.mxu1 %v321_v8 }
  0x1b   :  { %287 = vmatpush3.bf16.msra.mxu0 %v321_v8  ;;  %312 = vmatpush3.bf16.msra.mxu1 %v321_v8 }
  0x1c   :  { %288 = vmatprep.subr.bf16.mxu0 %v322_v9  ;;  %305 = vmatprep.subr.bf16.mxu1 %v322_v9 }
  0x1f   :  { %289 = vmatpush3.bf16.msra.mxu0 %v322_v9  ;;  %313 = vmatpush3.bf16.msra.mxu1 %v322_v9 }
  0x22   :  { %291 = vmatmul.mubr.bf16.vlgmr.msra.gmra.mxu0 %v324_v10  ;;  %295 = vmatmul.mubr.bf16.vlgmr.msra.gmra.mxu1 %v326_v11 }
  0xe2   :  { %v292_v13 = vpop.f32.mrf.mxu0  ;;  %v296_v14 = vpop.f32.mrf.mxu1 }
  0xe3   :  { %v219_v23 = vmul.f32 %v292_v13, %v292_v13  ;;  %v223_v36 = vmul.f32 %v296_v14, %v296_v14 }
  0xe4   :  { %v169_v15 = vpop.f32.mrf.mxu0  ;;  %v185_v17 = vpop.f32.mrf.mxu1 }
  0xe5   :  { %v217_v19 = vmul.f32 %v169_v15, %v169_v15  ;;  %v221_v30 = vmul.f32 %v185_v17, %v185_v17 }
  0xe6   :  { %v293_v16 = vpop.f32.mrf.mxu0  ;;  %v297_v22 = vpop.f32.mrf.mxu1 }
  0xe7   :  { %v220_v26 = vmul.f32 %v293_v16, %v293_v16  ;;  %v224_v39 = vmul.f32 %v297_v22, %v297_v22 }
  0xe8   :  { %v172_v18 = vpop.f32.mrf.mxu0  ;;  %v188_v29 = vpop.f32.mrf.mxu1 }
  0xe9   :  { %v201_v20 = vadd.f32 %v172_v18, %v169_v15  ;;  %v218_v21 = vmul.f32 %v172_v18, %v172_v18  ;;  %v222_v34 = vmul.f32 %v188_v29, %v188_v29 }
  0xeb   :  { %v202_v24 = vadd.f32 %v292_v13, %v201_v20  ;;  %v225_v25 = vadd.f32 %v218_v21, %v217_v19 }
  0xed   :  { %v226_v27 = vadd.f32 %v225_v25, %v219_v23  ;;  %v203_v28 = vadd.f32 %v293_v16, %v202_v24 }
  0xef   :  { %v204_v31 = vadd.f32 %v203_v28, %v185_v17  ;;  %v227_v32 = vadd.f32 %v226_v27, %v220_v26 }
  0xf1   :  { %v205_v33 = vadd.f32 %v204_v31, %v188_v29  ;;  %v228_v35 = vadd.f32 %v227_v32, %v221_v30 }
  0xf3   :  { %v206_v37 = vadd.f32 %v296_v14, %v205_v33  ;;  %v229_v38 = vadd.f32 %v228_v35, %v222_v34 }
  0xf5   :  { %v207_v40 = vadd.f32 %v297_v22, %v206_v37  ;;  %v230_v41 = vadd.f32 %v229_v38, %v223_v36 }
  0xf7   :  { %v208_v42 = vrot.slane %v207_v40, 4  ;;  %v231_v43 = vadd.f32 %v230_v41, %v224_v39 }
  0xf9   :  { %v209_v44 = vadd.f32 %v208_v42, %v207_v40  ;;  %v232_v45 = vrot.slane %v231_v43, 4 }
  0xfb   :  { %v210_v46 = vrot.slane %v209_v44, 2  ;;  %v233_v47 = vadd.f32 %v232_v45, %v231_v43 }
  0xfd   :  { %v211_v48 = vadd.f32 %v210_v46, %v209_v44  ;;  %v234_v49 = vrot.slane %v233_v47, 2 }
  0xff   :  { %v212_v50 = vrot.slane %v211_v48, 1  ;;  %v235_v51 = vadd.f32 %v234_v49, %v233_v47 }
 0x101   :  { %v213_v53 = vadd.f32 %v212_v50, %v211_v48  ;;  %v236_v54 = vrot.slane %v235_v51, 1 }
 0x103   :  { %v214_v56 = vadd.f32 %v213_v53, %v200_v52  ;;  %v237_v57 = vadd.f32 %v236_v54, %v235_v51 }
 0x105   :  { %215 = vst [vmem:[%s396_s2] sm:$0x1] %v214_v56  ;;  %v238_v58 = vadd.f32 %v237_v57, %v216_v55 }
 0x107   :  { %239 = vst [vmem:[%s396_s2 + $0x1] sm:$0x1] %v238_v58 }

</bundles_post_ra>
